<compile_context>
chip_gen: v7x
topology: tpu7x:2x2x1
jax: 0.10.0
libtpu: 0.0.40
codegen_flags: <defaults>
</compile_context>

<pallas_src>
import functools

import jax
import jax.numpy as jnp
from jax.experimental import pallas as pl
from jax.experimental.pallas import tpu as pltpu

LANE = 128


def _round_up(x, m):
    return (x + m - 1) // m * m


def _vae_kernel(x_ref, w1_ref, b1_ref, wh_ref, bh_ref, eps_ref,
                dw1_ref, db1_ref, dw2_ref, db2_ref,
                xhat_ref, heads_ref, *, l_pad):
    # ---- encoder: Linear(input -> hidden) + ReLU (dropout = identity, eval) ----
    h = jnp.dot(x_ref[...], w1_ref[...], preferred_element_type=jnp.float32)
    h = jnp.maximum(h + b1_ref[...], 0.0)

    # ---- fused mean|logvar heads: one matmul, lane-dense (TB, 2*l_pad) output ----
    heads = jnp.dot(h.astype(wh_ref.dtype), wh_ref[...],
                    preferred_element_type=jnp.float32) + bh_ref[...]
    mean = heads[:, :l_pad]          # 128-aligned lane slices
    logvar = heads[:, l_pad:]

    # ---- reparameterize (f32 on VPU/EUP): z = mean + eps * exp(0.5*logvar) ----
    z = mean + eps_ref[...] * jnp.exp(0.5 * logvar)

    # ---- decoder: Linear(latent -> hidden) + ReLU + Linear(hidden -> input) ----
    d = jnp.dot(z.astype(dw1_ref.dtype), dw1_ref[...],
                preferred_element_type=jnp.float32)
    d = jnp.maximum(d + db1_ref[...], 0.0)
    xhat = jnp.dot(d.astype(dw2_ref.dtype), dw2_ref[...],
                   preferred_element_type=jnp.float32) + db2_ref[...]

    xhat_ref[...] = xhat
    heads_ref[...] = heads


def vae_forward(x, params, eps, *, compute_dtype=jnp.bfloat16, block_b=256):
    """Fused VAE forward.

    x:   (B, input_shape) float32
    eps: (B, latent_dims) float32  (randn_like noise for reparameterization)
    returns (x_hat, mean, logvar) in float32
    """
    B, d_in = x.shape
    hidden = params["w1"].shape[1]
    latent = params["w_mean"].shape[1]

    d_in_p = _round_up(d_in, LANE)
    h_p = _round_up(hidden, LANE)
    l_p = _round_up(latent, LANE)

    def pad2(a, rows, cols):
        return jnp.pad(a, ((0, rows - a.shape[0]), (0, cols - a.shape[1])))

    # --- lane-dense, bf16 weights; f32 biases ---------------------------------
    w1 = pad2(params["w1"], d_in_p, h_p).astype(compute_dtype)
    b1 = pad2(params["b1"], 1, h_p)

    # fused heads: mean weights in lanes [0, l_p), logvar in [l_p, 2*l_p)
    wh = jnp.zeros((h_p, 2 * l_p), jnp.float32)
    wh = wh.at[:hidden, :latent].set(params["w_mean"])
    wh = wh.at[:hidden, l_p:l_p + latent].set(params["w_logvar"])
    wh = wh.astype(compute_dtype)
    bh = jnp.zeros((1, 2 * l_p), jnp.float32)
    bh = bh.at[:, :latent].set(params["b_mean"][0])
    bh = bh.at[:, l_p:l_p + latent].set(params["b_logvar"][0])

    dw1 = pad2(params["dec_w1"], l_p, h_p).astype(compute_dtype)
    db1 = pad2(params["dec_b1"], 1, h_p)
    dw2 = pad2(params["dec_w2"], h_p, d_in_p).astype(compute_dtype)
    db2 = pad2(params["dec_b2"], 1, d_in_p)

    # --- batch tiling ---------------------------------------------------------
    tb = min(block_b, _round_up(B, 8))     # multiple of 8 sublanes
    b_p = _round_up(B, tb)
    x_p = jnp.pad(x, ((0, b_p - B), (0, d_in_p - d_in))).astype(compute_dtype)
    eps_p = jnp.pad(eps, ((0, b_p - B), (0, l_p - latent)))   # f32

    grid = (b_p // tb,)
    batched = lambda shape: pl.BlockSpec(shape, lambda i: (i, 0))
    resident = lambda shape: pl.BlockSpec(shape, lambda i: (0, 0))

    in_specs = [
        batched((tb, d_in_p)),          # x
        resident((d_in_p, h_p)),        # w1
        resident((1, h_p)),             # b1
        resident((h_p, 2 * l_p)),       # fused head weights
        resident((1, 2 * l_p)),         # fused head biases
        batched((tb, l_p)),             # eps
        resident((l_p, h_p)),           # dec_w1
        resident((1, h_p)),             # dec_b1
        resident((h_p, d_in_p)),        # dec_w2
        resident((1, d_in_p)),          # dec_b2
    ]
    out_specs = (
        batched((tb, d_in_p)),          # x_hat (padded)
        batched((tb, 2 * l_p)),         # heads (mean | logvar, padded)
    )
    out_shape = (
        jax.ShapeDtypeStruct((b_p, d_in_p), jnp.float32),
        jax.ShapeDtypeStruct((b_p, 2 * l_p), jnp.float32),
    )

    x_hat_p, heads_p = pl.pallas_call(
        functools.partial(_vae_kernel, l_pad=l_p),
        out_shape=out_shape,
        grid=grid,
        in_specs=in_specs,
        out_specs=out_specs,
        compiler_params=pltpu.CompilerParams(
            dimension_semantics=("parallel",),
        ),
    )(x_p, w1, b1, wh, bh, eps_p, dw1, db1, dw2, db2)

    x_hat = x_hat_p[:B, :d_in]
    mean = heads_p[:B, :latent]
    logvar = heads_p[:B, l_p:l_p + latent]
    return x_hat, mean, logvar


def init_params(key, input_shape=100, latent_dims=20, hidden=50):
    """PyTorch-Linear-style uniform init; weights stored as (in, out) = torch weight.T."""
    def linear(k, fan_in, fan_out):
        kw, kb = jax.random.split(k)
        bound = 1.0 / jnp.sqrt(float(fan_in))
        w = jax.random.uniform(kw, (fan_in, fan_out), jnp.float32, -bound, bound)
        b = jax.random.uniform(kb, (1, fan_out), jnp.float32, -bound, bound)
        return w, b

    keys = jax.random.split(key, 5)
    w1, b1 = linear(keys[0], input_shape, hidden)               # encoder.linear1
    w_mean, b_mean = linear(keys[1], hidden, latent_dims)       # encoder.mean
    w_logvar, b_logvar = linear(keys[2], hidden, latent_dims)   # encoder.logvar
    dec_w1, dec_b1 = linear(keys[3], latent_dims, hidden)       # decoder.linear1
    dec_w2, dec_b2 = linear(keys[4], hidden, input_shape)       # decoder.linear2

    return dict(
        w1=w1, b1=b1,
        w_mean=w_mean, b_mean=b_mean,
        w_logvar=w_logvar, b_logvar=b_logvar,
        dec_w1=dec_w1, dec_b1=dec_b1,
        dec_w2=dec_w2, dec_b2=dec_b2,
    )


def vae_forward_ref(x, params, eps, compute_dtype=jnp.bfloat16):
    """Pure-JAX reference mimicking the kernel's bf16 matmul-operand quantization."""
    q = lambda a: a.astype(compute_dtype).astype(jnp.float32)
    h = jnp.maximum(q(x) @ q(params["w1"]) + params["b1"], 0.0)
    mean = q(h) @ q(params["w_mean"]) + params["b_mean"]
    logvar = q(h) @ q(params["w_logvar"]) + params["b_logvar"]
    z = mean + eps * jnp.exp(0.5 * logvar)
    d = jnp.maximum(q(z) @ q(params["dec_w1"]) + params["dec_b1"], 0.0)
    x_hat = q(d) @ q(params["dec_w2"]) + params["dec_b2"]
    return x_hat, mean, logvar


if __name__ == "__main__":
    INPUT_SHAPE = 100
    LATENT_DIMS = 20
    BATCH = 8

    key = jax.random.PRNGKey(0)
    k_params, k_x, k_eps = jax.random.split(key, 3)

    params = init_params(k_params, INPUT_SHAPE, LATENT_DIMS)
    x = jax.random.normal(k_x, (BATCH, INPUT_SHAPE), jnp.float32)
    # eps corresponds to torch.randn_like(std) in reparameterize()
    eps = jax.random.normal(k_eps, (BATCH, LATENT_DIMS), jnp.float32)

    x_hat, mean, logvar = vae_forward(x, params, eps)
    jax.block_until_ready((x_hat, mean, logvar))

    # correctness check against a pure-JAX reference (same bf16 operand rounding)
    xr, mr, lr = vae_forward_ref(x, params, eps)
    assert x_hat.shape == (BATCH, INPUT_SHAPE)
    assert mean.shape == (BATCH, LATENT_DIMS)
    assert logvar.shape == (BATCH, LATENT_DIMS)
    assert jnp.allclose(mean, mr, atol=2e-3, rtol=2e-3)
    assert jnp.allclose(logvar, lr, atol=2e-3, rtol=2e-3)
    assert jnp.allclose(x_hat, xr, atol=2e-3, rtol=2e-3)

    print("KERNEL_OK")
</pallas_src>

<mosaic_0001>
module attributes {stable_mosaic.version = 11 : i64} {
  func.func @_vae_kernel(%arg0: i32, %arg1: memref<8x128xbf16, #tpu.memory_space<vmem>>, %arg2: memref<128x128xbf16, #tpu.memory_space<vmem>>, %arg3: memref<1x128xf32, #tpu.memory_space<vmem>>, %arg4: memref<128x256xbf16, #tpu.memory_space<vmem>>, %arg5: memref<1x256xf32, #tpu.memory_space<vmem>>, %arg6: memref<8x128xf32, #tpu.memory_space<vmem>>, %arg7: memref<128x128xbf16, #tpu.memory_space<vmem>>, %arg8: memref<1x128xf32, #tpu.memory_space<vmem>>, %arg9: memref<128x128xbf16, #tpu.memory_space<vmem>>, %arg10: memref<1x128xf32, #tpu.memory_space<vmem>>, %arg11: memref<8x128xf32, #tpu.memory_space<vmem>>, %arg12: memref<8x256xf32, #tpu.memory_space<vmem>>) attributes {dimension_semantics = [#tpu.dimension_semantics<parallel>], iteration_bounds = array<i64: 1>, scalar_prefetch = 0 : i64, scratch_operands = 0 : i64, tpu.core_type = #tpu.core_type<tc>, window_params = [{transform_indices = @transform_0, window_bounds = array<i64: 8, 128>}, {pipeline_mode = #tpu.pipeline_mode<synchronous>, transform_indices = @transform_1, window_bounds = array<i64: 128, 128>}, {pipeline_mode = #tpu.pipeline_mode<synchronous>, transform_indices = @transform_2, window_bounds = array<i64: 1, 128>}, {pipeline_mode = #tpu.pipeline_mode<synchronous>, transform_indices = @transform_3, window_bounds = array<i64: 128, 256>}, {pipeline_mode = #tpu.pipeline_mode<synchronous>, transform_indices = @transform_4, window_bounds = array<i64: 1, 256>}, {transform_indices = @transform_5, window_bounds = array<i64: 8, 128>}, {pipeline_mode = #tpu.pipeline_mode<synchronous>, transform_indices = @transform_6, window_bounds = array<i64: 128, 128>}, {pipeline_mode = #tpu.pipeline_mode<synchronous>, transform_indices = @transform_7, window_bounds = array<i64: 1, 128>}, {pipeline_mode = #tpu.pipeline_mode<synchronous>, transform_indices = @transform_8, window_bounds = array<i64: 128, 128>}, {pipeline_mode = #tpu.pipeline_mode<synchronous>, transform_indices = @transform_9, window_bounds = array<i64: 1, 128>}, {transform_indices = @transform_10, window_bounds = array<i64: 8, 128>}, {transform_indices = @transform_11, window_bounds = array<i64: 8, 256>}]} {
    %c0 = arith.constant 0 : index
    %c0_0 = arith.constant 0 : index
    %0 = vector.load %arg1[%c0, %c0_0] : memref<8x128xbf16, #tpu.memory_space<vmem>>, vector<8x128xbf16>
    %c0_1 = arith.constant 0 : index
    %c0_2 = arith.constant 0 : index
    %1 = vector.load %arg2[%c0_1, %c0_2] : memref<128x128xbf16, #tpu.memory_space<vmem>>, vector<128x128xbf16>
    %cst = arith.constant dense<0.000000e+00> : vector<8x128xf32>
    %2 = tpu.matmul %0, %1, %cst {dimension_numbers = #tpu.dot_dimension_numbers<[1], [0], [0], [1], [0, 0, 1, 1], [], []>} : vector<8x128xbf16>, vector<128x128xbf16>, vector<8x128xf32> -> vector<8x128xf32>
    %c0_3 = arith.constant 0 : index
    %c0_4 = arith.constant 0 : index
    %3 = vector.load %arg3[%c0_3, %c0_4] : memref<1x128xf32, #tpu.memory_space<vmem>>, vector<1x128xf32>
    %4 = vector.broadcast %3 : vector<1x128xf32> to vector<8x128xf32>
    %5 = arith.addf %2, %4 : vector<8x128xf32>
    %cst_5 = arith.constant 0.000000e+00 : f32
    %6 = vector.broadcast %cst_5 : f32 to vector<8x128xf32>
    %7 = arith.maximumf %5, %6 : vector<8x128xf32>
    %8 = arith.truncf %7 : vector<8x128xf32> to vector<8x128xbf16>
    %c0_6 = arith.constant 0 : index
    %c0_7 = arith.constant 0 : index
    %9 = vector.load %arg4[%c0_6, %c0_7] : memref<128x256xbf16, #tpu.memory_space<vmem>>, vector<128x256xbf16>
    %cst_8 = arith.constant dense<0.000000e+00> : vector<8x256xf32>
    %10 = tpu.matmul %8, %9, %cst_8 {dimension_numbers = #tpu.dot_dimension_numbers<[1], [0], [0], [1], [0, 0, 1, 1], [], []>} : vector<8x128xbf16>, vector<128x256xbf16>, vector<8x256xf32> -> vector<8x256xf32>
    %c0_9 = arith.constant 0 : index
    %c0_10 = arith.constant 0 : index
    %11 = vector.load %arg5[%c0_9, %c0_10] : memref<1x256xf32, #tpu.memory_space<vmem>>, vector<1x256xf32>
    %12 = vector.broadcast %11 : vector<1x256xf32> to vector<8x256xf32>
    %13 = arith.addf %10, %12 : vector<8x256xf32>
    %14 = vector.extract_strided_slice %13 {offsets = [0, 0], sizes = [8, 128], strides = [1, 1]} : vector<8x256xf32> to vector<8x128xf32>
    %15 = vector.extract_strided_slice %13 {offsets = [0, 128], sizes = [8, 128], strides = [1, 1]} : vector<8x256xf32> to vector<8x128xf32>
    %c0_11 = arith.constant 0 : index
    %c0_12 = arith.constant 0 : index
    %16 = vector.load %arg6[%c0_11, %c0_12] : memref<8x128xf32, #tpu.memory_space<vmem>>, vector<8x128xf32>
    %cst_13 = arith.constant 5.000000e-01 : f32
    %17 = vector.broadcast %cst_13 : f32 to vector<8x128xf32>
    %18 = arith.mulf %17, %15 : vector<8x128xf32>
    %19 = math.exp %18 : vector<8x128xf32>
    %20 = arith.mulf %16, %19 : vector<8x128xf32>
    %21 = arith.addf %14, %20 : vector<8x128xf32>
    %22 = arith.truncf %21 : vector<8x128xf32> to vector<8x128xbf16>
    %c0_14 = arith.constant 0 : index
    %c0_15 = arith.constant 0 : index
    %23 = vector.load %arg7[%c0_14, %c0_15] : memref<128x128xbf16, #tpu.memory_space<vmem>>, vector<128x128xbf16>
    %cst_16 = arith.constant dense<0.000000e+00> : vector<8x128xf32>
    %24 = tpu.matmul %22, %23, %cst_16 {dimension_numbers = #tpu.dot_dimension_numbers<[1], [0], [0], [1], [0, 0, 1, 1], [], []>} : vector<8x128xbf16>, vector<128x128xbf16>, vector<8x128xf32> -> vector<8x128xf32>
    %c0_17 = arith.constant 0 : index
    %c0_18 = arith.constant 0 : index
    %25 = vector.load %arg8[%c0_17, %c0_18] : memref<1x128xf32, #tpu.memory_space<vmem>>, vector<1x128xf32>
    %26 = vector.broadcast %25 : vector<1x128xf32> to vector<8x128xf32>
    %27 = arith.addf %24, %26 : vector<8x128xf32>
    %cst_19 = arith.constant 0.000000e+00 : f32
    %28 = vector.broadcast %cst_19 : f32 to vector<8x128xf32>
    %29 = arith.maximumf %27, %28 : vector<8x128xf32>
    %30 = arith.truncf %29 : vector<8x128xf32> to vector<8x128xbf16>
    %c0_20 = arith.constant 0 : index
    %c0_21 = arith.constant 0 : index
    %31 = vector.load %arg9[%c0_20, %c0_21] : memref<128x128xbf16, #tpu.memory_space<vmem>>, vector<128x128xbf16>
    %cst_22 = arith.constant dense<0.000000e+00> : vector<8x128xf32>
    %32 = tpu.matmul %30, %31, %cst_22 {dimension_numbers = #tpu.dot_dimension_numbers<[1], [0], [0], [1], [0, 0, 1, 1], [], []>} : vector<8x128xbf16>, vector<128x128xbf16>, vector<8x128xf32> -> vector<8x128xf32>
    %c0_23 = arith.constant 0 : index
    %c0_24 = arith.constant 0 : index
    %33 = vector.load %arg10[%c0_23, %c0_24] : memref<1x128xf32, #tpu.memory_space<vmem>>, vector<1x128xf32>
    %34 = vector.broadcast %33 : vector<1x128xf32> to vector<8x128xf32>
    %35 = arith.addf %32, %34 : vector<8x128xf32>
    %c0_25 = arith.constant 0 : index
    %c0_26 = arith.constant 0 : index
    %36 = vector.load %arg11[%c0_25, %c0_26] : memref<8x128xf32, #tpu.memory_space<vmem>>, vector<8x128xf32>
    tpu.vector_store %arg11[%c0_25, %c0_26], %35 {strides = array<i32>} : memref<8x128xf32, #tpu.memory_space<vmem>>, vector<8x128xf32>,
    %c0_27 = arith.constant 0 : index
    %c0_28 = arith.constant 0 : index
    %37 = vector.load %arg12[%c0_27, %c0_28] : memref<8x256xf32, #tpu.memory_space<vmem>>, vector<8x256xf32>
    tpu.vector_store %arg12[%c0_27, %c0_28], %13 {strides = array<i32>} : memref<8x256xf32, #tpu.memory_space<vmem>>, vector<8x256xf32>,
    return
  }
  func.func @transform_0(%arg0: i32) -> (i32, i32) {
    %c0_i32 = arith.constant 0 : i32
    %c0_i32_0 = arith.constant 0 : i32
    return %arg0, %c0_i32 : i32, i32
  }
  func.func @transform_1(%arg0: i32) -> (i32, i32) {
    %c0_i32 = arith.constant 0 : i32
    %c0_i32_0 = arith.constant 0 : i32
    %c0_i32_1 = arith.constant 0 : i32
    return %c0_i32, %c0_i32_0 : i32, i32
  }
  func.func @transform_2(%arg0: i32) -> (i32, i32) {
    %c0_i32 = arith.constant 0 : i32
    %c0_i32_0 = arith.constant 0 : i32
    %c0_i32_1 = arith.constant 0 : i32
    return %c0_i32, %c0_i32_0 : i32, i32
  }
  func.func @transform_3(%arg0: i32) -> (i32, i32) {
    %c0_i32 = arith.constant 0 : i32
    %c0_i32_0 = arith.constant 0 : i32
    %c0_i32_1 = arith.constant 0 : i32
    return %c0_i32, %c0_i32_0 : i32, i32
  }
  func.func @transform_4(%arg0: i32) -> (i32, i32) {
    %c0_i32 = arith.constant 0 : i32
    %c0_i32_0 = arith.constant 0 : i32
    %c0_i32_1 = arith.constant 0 : i32
    return %c0_i32, %c0_i32_0 : i32, i32
  }
  func.func @transform_5(%arg0: i32) -> (i32, i32) {
    %c0_i32 = arith.constant 0 : i32
    %c0_i32_0 = arith.constant 0 : i32
    return %arg0, %c0_i32 : i32, i32
  }
  func.func @transform_6(%arg0: i32) -> (i32, i32) {
    %c0_i32 = arith.constant 0 : i32
    %c0_i32_0 = arith.constant 0 : i32
    %c0_i32_1 = arith.constant 0 : i32
    return %c0_i32, %c0_i32_0 : i32, i32
  }
  func.func @transform_7(%arg0: i32) -> (i32, i32) {
    %c0_i32 = arith.constant 0 : i32
    %c0_i32_0 = arith.constant 0 : i32
    %c0_i32_1 = arith.constant 0 : i32
    return %c0_i32, %c0_i32_0 : i32, i32
  }
  func.func @transform_8(%arg0: i32) -> (i32, i32) {
    %c0_i32 = arith.constant 0 : i32
    %c0_i32_0 = arith.constant 0 : i32
    %c0_i32_1 = arith.constant 0 : i32
    return %c0_i32, %c0_i32_0 : i32, i32
  }
  func.func @transform_9(%arg0: i32) -> (i32, i32) {
    %c0_i32 = arith.constant 0 : i32
    %c0_i32_0 = arith.constant 0 : i32
    %c0_i32_1 = arith.constant 0 : i32
    return %c0_i32, %c0_i32_0 : i32, i32
  }
  func.func @transform_10(%arg0: i32) -> (i32, i32) {
    %c0_i32 = arith.constant 0 : i32
    %c0_i32_0 = arith.constant 0 : i32
    return %arg0, %c0_i32 : i32, i32
  }
  func.func @transform_11(%arg0: i32) -> (i32, i32) {
    %c0_i32 = arith.constant 0 : i32
    %c0_i32_0 = arith.constant 0 : i32
    return %arg0, %c0_i32 : i32, i32
  }
}

</mosaic_0001>

<bundles_post_ra>
// kernel: tpu_custom_call.1
= control target key start
LH: loop header
LB: loop body
LE: loop exit
PB: predicated region body
PF: predicated region fallthrough
CT: control target
= control target key end

     0   :  { %17 = vsyncpa [#allocation3], 0  ;;  %s1204_s0 = inlined_call_operand.hbm [shape: bf16[8,128], index: 0, kind: input, shape index: {}]   ;;  %s1205_s1 = inlined_call_operand.hbm [shape: bf16[128,128], index: 1, kind: input, shape index: {}]   ;;  %s1206_s2 = inlined_call_operand.vmem [shape: f32[1,128], index: 2, kind: input, shape index: {}]   ;;  %s1207_s3 = inlined_call_operand.hbm [shape: bf16[128,256], index: 3, kind: input, shape index: {}]   ;;  %s1208_s4 = inlined_call_operand.vmem [shape: f32[1,256], index: 4, kind: input, shape index: {}]   ;;  %s1209_s5 = inlined_call_operand.vmem [shape: f32[8,128], index: 5, kind: input, shape index: {}]   ;;  %s1210_s6 = inlined_call_operand.hbm [shape: bf16[128,128], index: 6, kind: input, shape index: {}]   ;;  %s1211_s7 = inlined_call_operand.vmem [shape: f32[1,128], index: 7, kind: input, shape index: {}]   ;;  %s1212_s8 = inlined_call_operand.hbm [shape: bf16[128,128], index: 8, kind: input, shape index: {}]   ;;  %s1213_s9 = inlined_call_operand.vmem [shape: f32[1,128], index: 9, kind: input, shape index: {}]   ;;  %s1214_s10 = inlined_call_operand.hbm [shape: f32[8,128], index: 10, kind: output, shape index: {0}]   ;;  %s1215_s11 = inlined_call_operand.hbm [shape: f32[8,256], index: 11, kind: output, shape index: {1}]  }
   0x1   :  { %18 = vsyncpa [#allocation6], 0 }
   0x2   :  { %19 = vsyncpa [#allocation9], 0 }
   0x3   :  { %20 = vsyncpa [#allocation4], 0 }
   0x4   :  { %21 = vsyncpa [#allocation13], 0  ;;  %s992_s17 = smov [#allocation5]   ;;  %s828_s21 = scalar_lea.hbm %s1205_s1, 1024 }
   0x5   :  { %s37_s18 = sshll.u32 %s992_s17, 4  ;;  %p829_p0 = scmp.ne.s32.totalorder %s1205_s1, %s828_s21  ;;  %s38_s18 = int_to_ptr.vmem [resolvable:$true] %s37_s18 }
   0x6   :  { %p832_p1 = scmp.lt.u32.totalorder %s828_s21, %s1205_s1 }
   0x8   :  { %p834_p2 = pnand %p832_p1, %p829_p0 }
   0xa   :  { %837 = shalt.err (!%p834_p2)
}
   0xb   :  { %s838_s26 = scalar_lea.vmem %s38_s18, 1024  ;;  %p843_p4 = scmp.lt.s32.totalorder %s38_s18, %s38_s18 }
   0xc   :  { %p839_p3 = scmp.ne.s32.totalorder %s38_s18, %s838_s26  ;;  %p844_p5 = scmp.lt.s32.totalorder %s838_s26, %s838_s26 }
   0xe   :  { %p845_p6 = por %p844_p5, %p843_p4 }
  0x10   :  { %p846_p7 = pnand %p845_p6, %p839_p3 }
  0x12   :  { %849 = shalt.err (!%p846_p7)
}
  0x13   :  { %s993_s27 = smov 64   ;;  %s994_s28 = smov 4  }
  0x14   :  { %43 = dma.hbm_to_vmem [thread:$0]  %s1205_s1, 1024, %s38_s18, [#allocation6], %s993_s27, %s993_s27, %s994_s28  }
  0x15   :  { %s995_s12 = smov [#allocation8]   ;;  %s996_s14 = smov [#allocation2]  }
  0x16   :  { %s67_s13 = sshll.u32 %s995_s12, 4  ;;  %s28_s15 = sshll.u32 %s996_s14, 4  ;;  %s68_s13 = int_to_ptr.vmem [resolvable:$true] %s67_s13  ;;  %s29_s15 = int_to_ptr.vmem [resolvable:$true] %s28_s15 }
  0x17   :  { %s850_s19 = scalar_lea.hbm %s1210_s6, 1024 }
  0x18   :  { %p851_p8 = scmp.ne.s32.totalorder %s1210_s6, %s850_s19  ;;  %p854_p9 = scmp.lt.u32.totalorder %s850_s19, %s1210_s6 }
  0x1a   :  { %p856_p10 = pnand %p854_p9, %p851_p8 }
  0x1c   :  { %859 = shalt.err (!%p856_p10)
}
  0x1d   :  { %s860_s1 = scalar_lea.vmem %s68_s13, 1024  ;;  %p865_p12 = scmp.lt.s32.totalorder %s68_s13, %s68_s13 }
  0x1e   :  { %p861_p11 = scmp.ne.s32.totalorder %s68_s13, %s860_s1  ;;  %p866_p13 = scmp.lt.s32.totalorder %s860_s1, %s860_s1 }
  0x20   :  { %p867_p0 = por %p866_p13, %p865_p12 }
  0x22   :  { %p868_p1 = pnand %p867_p0, %p861_p11 }
  0x24   :  { %871 = shalt.err (!%p868_p1)
}
  0x25   :  { %73 = dma.hbm_to_vmem [thread:$0]  %s1210_s6, 1024, %s68_s13, [#allocation9], %s993_s27, %s993_s27, %s994_s28  }
  0x26   :  { %s872_s29 = scalar_lea.hbm %s1204_s0, 64 }
  0x27   :  { %p873_p2 = scmp.ne.s32.totalorder %s1204_s0, %s872_s29  ;;  %p876_p3 = scmp.lt.u32.totalorder %s872_s29, %s1204_s0 }
  0x29   :  { %p878_p4 = pnand %p876_p3, %p873_p2 }
  0x2b   :  { %881 = shalt.err (!%p878_p4)
}
  0x2c   :  { %s882_s17 = scalar_lea.vmem %s29_s15, 64  ;;  %p887_p6 = scmp.lt.s32.totalorder %s29_s15, %s29_s15 }
  0x2d   :  { %p883_p5 = scmp.ne.s32.totalorder %s29_s15, %s882_s17  ;;  %p888_p7 = scmp.lt.s32.totalorder %s882_s17, %s882_s17 }
  0x2f   :  { %p889_p8 = por %p888_p7, %p887_p6 }
  0x31   :  { %p890_p9 = pnand %p889_p8, %p883_p5 }
  0x33   :  { %893 = shalt.err (!%p890_p9)
}
  0x34   :  { %31 = dma.hbm_to_vmem [thread:$0]  %s1204_s0, 64, %s29_s15, [#allocation3]  }
  0x35   :  { %s997_s19 = smov [#allocation7]   ;;  %s894_s23 = scalar_lea.hbm %s1207_s3, 2048 }
  0x36   :  { %s51_s20 = sshll.u32 %s997_s19, 4  ;;  %p895_p10 = scmp.ne.s32.totalorder %s1207_s3, %s894_s23  ;;  %s52_s20 = int_to_ptr.vmem [resolvable:$true] %s51_s20 }
  0x37   :  { %p898_p11 = scmp.lt.u32.totalorder %s894_s23, %s1207_s3 }
  0x39   :  { %p900_p12 = pnand %p898_p11, %p895_p10 }
  0x3b   :  { %903 = shalt.err (!%p900_p12)
}
  0x3c   :  { %s904_s26 = scalar_lea.vmem %s52_s20, 2048  ;;  %p909_p0 = scmp.lt.s32.totalorder %s52_s20, %s52_s20 }
  0x3d   :  { %p905_p13 = scmp.ne.s32.totalorder %s52_s20, %s904_s26  ;;  %p910_p1 = scmp.lt.s32.totalorder %s904_s26, %s904_s26 }
  0x3f   :  { %p911_p2 = por %p910_p1, %p909_p0 }
  0x41   :  { %p912_p3 = pnand %p911_p2, %p905_p13 }
  0x43   :  { %915 = shalt.err (!%p912_p3)
}
  0x44   :  { %s998_s0 = smov 128   ;;  %s999_s15 = smov 8  }
  0x45   :  { %57 = dma.hbm_to_vmem [thread:$0]  %s1207_s3, 2048, %s52_s20, [#allocation6], %s998_s0, %s998_s0, %s999_s15  }
  0x46   :  { %s1000_s12 = smov [#allocation10]   ;;  %s916_s6 = scalar_lea.hbm %s1212_s8, 1024 }
  0x47   :  { %s81_s14 = sshll.u32 %s1000_s12, 4  ;;  %p917_p4 = scmp.ne.s32.totalorder %s1212_s8, %s916_s6  ;;  %s82_s14 = int_to_ptr.vmem [resolvable:$true] %s81_s14 }
  0x48   :  { %p920_p5 = scmp.lt.u32.totalorder %s916_s6, %s1212_s8 }
  0x4a   :  { %p922_p6 = pnand %p920_p5, %p917_p4 }
  0x4c   :  { %925 = shalt.err (!%p922_p6)
}
  0x4d   :  { %s926_s23 = scalar_lea.vmem %s82_s14, 1024  ;;  %p931_p8 = scmp.lt.s32.totalorder %s82_s14, %s82_s14 }
  0x4e   :  { %p927_p7 = scmp.ne.s32.totalorder %s82_s14, %s926_s23  ;;  %p932_p9 = scmp.lt.s32.totalorder %s926_s23, %s926_s23 }
  0x50   :  { %p933_p10 = por %p932_p9, %p931_p8 }
  0x52   :  { %p934_p11 = pnand %p933_p10, %p927_p7 }
  0x54   :  { %937 = shalt.err (!%p934_p11)
}
  0x55   :  { %87 = dma.hbm_to_vmem [thread:$0]  %s1212_s8, 1024, %s82_s14, [#allocation9], %s993_s27, %s993_s27, %s994_s28  }
  0x56   :  { %982 = dma.done.wait [#allocation3], 64  }
  0x57   :  { %983 = vsyncadd [#allocation3], 4294967232 }
  0x58   :  { %984 = dma.done.wait [#allocation6], 3072  }
  0x59   :  { %985 = vsyncadd [#allocation6], 4294964224 }
  0x5a   :  { %986 = dma.done.wait [#allocation9], 2048  }
  0x5b   :  { %987 = vsyncadd [#allocation9], 4294965248  ;;  %v1001_v0 = vmov 0.0   ;;  %vm1002_vm0 = vmmov 0   ;;  %v778_v1 = vld [vmem:[#allocation5] sm:$0xff]   ;;  %v779_v2 = vld [vmem:[#allocation5 + $0x8] sm:$0xff]   ;;  %v238_v49 = vlaneseq }
  0x5c   :  { %704 = vmatprep.subr.bf16.mxu0 %v1001_v0  ;;  %720 = vmatprep.mubr.msk.bf16.mxu0 %vm1002_vm0, %v1001_v0  ;;  %v780_v3 = vld [vmem:[#allocation5 + $0x10] sm:$0xff]   ;;  %v786_v4 = vld [vmem:[#allocation7 + $0x4] ss:$8 sps:$4 sm:$0xff]   ;;  %v788_v5 = vld [vmem:[#allocation7] ss:$8 sps:$4 sm:$0xff]   ;;  %v1003_v26 = vmov 0  }
  0x5d   :  { %705 = vmatpush3.bf16.msra.mxu0 %v778_v1  ;;  %v781_v6 = vld [vmem:[#allocation5 + $0x18] sm:$0xff]   ;;  %328 = vmatprep.subr.bf16.mxu1 %v786_v4  ;;  %v792_v9 = vld [vmem:[#allocation7 + $0x24] ss:$8 sps:$4 sm:$0xff]   ;;  %v794_v11 = vld [vmem:[#allocation7 + $0x20] ss:$8 sps:$4 sm:$0xff]   ;;  %v239_v50 = vshrl.u32 %v238_v49, 7 }
  0x5e   :  { %706 = vmatprep.subr.bf16.mxu0 %v1001_v0  ;;  %v789_v7 = vld [vmem:[#allocation7 + $0x14] ss:$8 sps:$4 sm:$0xff]   ;;  %329 = vmatpush1.bf16.msra.mxu1 %v788_v5  ;;  %v791_v8 = vld [vmem:[#allocation7 + $0x10] ss:$8 sps:$4 sm:$0xff]   ;;  %v782_v10 = vld [vmem:[#allocation5 + $0x20] sm:$0xff]  }
  0x5f   :  { %330 = vmatprep.subr.bf16.mxu1 %v789_v7  ;;  %v783_v12 = vld [vmem:[#allocation5 + $0x28] sm:$0xff]   ;;  %v795_v13 = vld [vmem:[#allocation7 + $0x34] ss:$8 sps:$4 sm:$0xff]   ;;  %v797_v14 = vld [vmem:[#allocation7 + $0x30] ss:$8 sps:$4 sm:$0xff]   ;;  %360 = vmatprep.mubr.bf16.mxu1 %v1003_v26  ;;  %v240_v51 = vsub.s32 0, %v239_v50 }
  0x60   :  { %v798_v15 = vld [vmem:[#allocation7 + $0x44] ss:$8 sps:$4 sm:$0xff]   ;;  %v784_v16 = vld [vmem:[#allocation5 + $0x30] sm:$0xff]   ;;  %v800_v17 = vld [vmem:[#allocation7 + $0x40] ss:$8 sps:$4 sm:$0xff]   ;;  %v244_v53 = vsub.s32 1, %v239_v50 }
  0x61   :  { %707 = vmatpush3.bf16.msra.mxu0 %v779_v2  ;;  %v801_v18 = vld [vmem:[#allocation7 + $0x54] ss:$8 sps:$4 sm:$0xff]   ;;  %v803_v20 = vld [vmem:[#allocation7 + $0x50] ss:$8 sps:$4 sm:$0xff]   ;;  %v804_v21 = vld [vmem:[#allocation7 + $0x64] ss:$8 sps:$4 sm:$0xff]  }
  0x62   :  { %708 = vmatprep.subr.bf16.mxu0 %v1001_v0  ;;  %331 = vmatpush1.bf16.msra.mxu1 %v791_v8  ;;  %v785_v19 = vld [vmem:[#allocation5 + $0x38] sm:$0xff]   ;;  %v806_v23 = vld [vmem:[#allocation7 + $0x60] ss:$8 sps:$4 sm:$0xff]   ;;  %v634_v29 = vld [vmem:[%s1206_s2] ss:$0 sm:$0xff] }
  0x63   :  { %332 = vmatprep.subr.bf16.mxu1 %v792_v9  ;;  %v106_v22 = vld [vmem:[#allocation2] sm:$0xf]  ;;  %v809_v25 = vld [vmem:[#allocation7 + $0x70] ss:$8 sps:$4 sm:$0xff]   ;;  %v810_v27 = vld [vmem:[#allocation8] sm:$0xff]  }
  0x64   :  { %v807_v24 = vld [vmem:[#allocation7 + $0x74] ss:$8 sps:$4 sm:$0xff]   ;;  %v811_v28 = vld [vmem:[#allocation8 + $0x8] sm:$0xff]   ;;  %v814_v39 = vld [vmem:[#allocation8 + $0x20] sm:$0xff]  }
  0x65   :  { %709 = vmatpush3.bf16.msra.mxu0 %v780_v3  ;;  %v812_v37 = vld [vmem:[#allocation8 + $0x10] sm:$0xff]   ;;  %v813_v38 = vld [vmem:[#allocation8 + $0x18] sm:$0xff]   ;;  %v815_v40 = vld [vmem:[#allocation8 + $0x28] sm:$0xff]  }
  0x66   :  { %710 = vmatprep.subr.bf16.mxu0 %v1001_v0  ;;  %333 = vmatpush1.bf16.msra.mxu1 %v794_v11  ;;  %v816_v41 = vld [vmem:[#allocation8 + $0x30] sm:$0xff]   ;;  %v817_v42 = vld [vmem:[#allocation8 + $0x38] sm:$0xff]   ;;  %v818_v43 = vld [vmem:[#allocation10] sm:$0xff]  }
  0x67   :  { %334 = vmatprep.subr.bf16.mxu1 %v795_v13  ;;  %v819_v44 = vld [vmem:[#allocation10 + $0x8] sm:$0xff]   ;;  %v820_v45 = vld [vmem:[#allocation10 + $0x10] sm:$0xff]   ;;  %v821_v46 = vld [vmem:[#allocation10 + $0x18] sm:$0xff]  }
  0x68   :  { %v822_v47 = vld [vmem:[#allocation10 + $0x20] sm:$0xff]   ;;  %v823_v48 = vld [vmem:[#allocation10 + $0x28] sm:$0xff]   ;;  %v236_v52 = vld [vmem:[%s1208_s4] sm:$0x3] }
  0x69   :  { %711 = vmatpush3.bf16.msra.mxu0 %v781_v6  ;;  %v241_v54 = vrot.slane %v236_v52, %v240_v51  ;;  %v245_v55 = vrot.slane %v236_v52, %v244_v53  ;;  %v369_v1 = vld [vmem:[%s1209_s5] sm:$0xff]  ;;  %s1004_s5 = smov [#allocation12]  }
  0x6a   :  { %712 = vmatprep.subr.bf16.mxu0 %v1001_v0  ;;  %335 = vmatpush1.bf16.msra.mxu1 %v797_v14  ;;  %v824_v6 = vld [vmem:[#allocation10 + $0x30] sm:$0xff]   ;;  %v825_v7 = vld [vmem:[#allocation10 + $0x38] sm:$0xff]   ;;  %s619_s25 = sshll.u32 %s1004_s5, 4  ;;  %s620_s25 = int_to_ptr.vmem [resolvable:$true] %s619_s25 }
  0x6b   :  { %336 = vmatprep.subr.bf16.mxu1 %v798_v15  ;;  %v659_v8 = vld [vmem:[%s1211_s7] ss:$0 sm:$0xff]  ;;  %s938_s26 = scalar_lea.vmem %s620_s25, 256  ;;  %p943_p13 = scmp.lt.s32.totalorder %s620_s25, %s620_s25 }
  0x6c   :  { %p939_p12 = scmp.ne.s32.totalorder %s620_s25, %s938_s26  ;;  %p944_p0 = scmp.lt.s32.totalorder %s938_s26, %s938_s26 }
  0x6d   :  { %713 = vmatpush3.bf16.msra.mxu0 %v782_v10 }
  0x6e   :  { %714 = vmatprep.subr.bf16.mxu0 %v1001_v0  ;;  %337 = vmatpush1.bf16.msra.mxu1 %v800_v17  ;;  %p945_p1 = por %p944_p0, %p943_p13 }
  0x6f   :  { %338 = vmatprep.subr.bf16.mxu1 %v801_v18 }
  0x70   :  { %p946_p2 = pnand %p945_p1, %p939_p12 }
  0x71   :  { %715 = vmatpush3.bf16.msra.mxu0 %v783_v12 }
  0x72   :  { %716 = vmatprep.subr.bf16.mxu0 %v1001_v0  ;;  %339 = vmatpush1.bf16.msra.mxu1 %v803_v20 }
  0x73   :  { %340 = vmatprep.subr.bf16.mxu1 %v804_v21 }
  0x75   :  { %717 = vmatpush3.bf16.msra.mxu0 %v784_v16 }
  0x76   :  { %718 = vmatprep.subr.bf16.mxu0 %v1001_v0  ;;  %341 = vmatpush1.bf16.msra.mxu1 %v806_v23 }
  0x77   :  { %342 = vmatprep.subr.bf16.mxu1 %v807_v24 }
  0x79   :  { %719 = vmatpush3.bf16.msra.mxu0 %v785_v19 }
  0x7a   :  { %724 = vmatprep.subr.bf16.mxu0 %v1001_v0  ;;  %343 = vmatpush1.bf16.msra.mxu1 %v809_v25 }
  0x7b   :  { %744 = vmatprep.subr.bf16.mxu1 %v1001_v0 }
  0x7c   :  { %721 = vmatmul.mubr.bf16.vlgmr.msra.gmra.mrb[0].mxu0 %v106_v22 }
  0x7d   :  { %740 = vmatprep.mubr.msk.bf16.mxu0 %vm1002_vm0, %v1001_v0  ;;  %725 = vmatpush3.bf16.msra.mxu0 %v810_v27 }
  0x7e   :  { %726 = vmatprep.subr.bf16.mxu0 %v1001_v0 }
  0x81   :  { %727 = vmatpush3.bf16.msra.mxu0 %v811_v28 }
  0x82   :  { %728 = vmatprep.subr.bf16.mxu0 %v1001_v0 }
  0x85   :  { %729 = vmatpush3.bf16.msra.mxu0 %v812_v37 }
  0x86   :  { %730 = vmatprep.subr.bf16.mxu0 %v1001_v0 }
  0x89   :  { %731 = vmatpush3.bf16.msra.mxu0 %v813_v38 }
  0x8a   :  { %732 = vmatprep.subr.bf16.mxu0 %v1001_v0 }
  0x8d   :  { %733 = vmatpush3.bf16.msra.mxu0 %v814_v39 }
  0x8e   :  { %734 = vmatprep.subr.bf16.mxu0 %v1001_v0 }
  0x91   :  { %735 = vmatpush3.bf16.msra.mxu0 %v815_v40 }
  0x92   :  { %736 = vmatprep.subr.bf16.mxu0 %v1001_v0 }
  0x95   :  { %737 = vmatpush3.bf16.msra.mxu0 %v816_v41 }
  0x96   :  { %738 = vmatprep.subr.bf16.mxu0 %v1001_v0 }
  0x99   :  { %739 = vmatpush3.bf16.msra.mxu0 %v817_v42 }
 0x14f   :  { %v212_v30 = vpop.f32.mrb[0].mxu0 }
 0x150   :  { %v213_v31 = vadd.f32 %v634_v29, %v212_v30  ;;  %v722_v32 = vpop.f32.mrb[1].mxu0 }
 0x151   :  { %v215_v33 = vpop.f32.mrb[2].mxu0 }
 0x152   :  { %v218_v34 = vmax.f32 %v213_v31, 0.0  ;;  %v723_v35 = vpop.f32.mrb[3].mxu0 }
 0x154   :  { %v219_v36 = vpack.c.bf16 %v218_v34, %v218_v34 }
 0x156   :  { %361 = vmatmul.mubr.bf16.vlgmr.msra.gmra.mrb[0].mxu1 %v219_v36 }
 0x157   :  { %760 = vmatprep.mubr.msk.bf16.mxu1 %vm1002_vm0, %v1001_v0  ;;  %745 = vmatpush3.bf16.msra.mxu1 %v818_v43 }
 0x158   :  { %746 = vmatprep.subr.bf16.mxu1 %v1001_v0 }
 0x15b   :  { %747 = vmatpush3.bf16.msra.mxu1 %v819_v44 }
 0x15c   :  { %748 = vmatprep.subr.bf16.mxu1 %v1001_v0 }
 0x15f   :  { %749 = vmatpush3.bf16.msra.mxu1 %v820_v45 }
 0x160   :  { %750 = vmatprep.subr.bf16.mxu1 %v1001_v0 }
 0x163   :  { %751 = vmatpush3.bf16.msra.mxu1 %v821_v46 }
 0x164   :  { %752 = vmatprep.subr.bf16.mxu1 %v1001_v0 }
 0x167   :  { %753 = vmatpush3.bf16.msra.mxu1 %v822_v47 }
 0x168   :  { %754 = vmatprep.subr.bf16.mxu1 %v1001_v0 }
 0x16b   :  { %755 = vmatpush3.bf16.msra.mxu1 %v823_v48 }
 0x16c   :  { %756 = vmatprep.subr.bf16.mxu1 %v1001_v0 }
 0x16f   :  { %757 = vmatpush3.bf16.msra.mxu1 %v824_v6 }
 0x170   :  { %758 = vmatprep.subr.bf16.mxu1 %v1001_v0 }
 0x173   :  { %759 = vmatpush3.bf16.msra.mxu1 %v825_v7 }
 0x229   :  { %v362_v56 = vpop.f32.mrb[0].mxu1 }
 0x22a   :  { %v363_v57 = vadd.f32 %v362_v56, %v241_v54  ;;  %v364_v58 = vpop.f32.mrb[1].mxu1 }
 0x22b   :  { %v365_v59 = vadd.f32 %v364_v58, %v245_v55  ;;  %v366_v60 = vpop.f32.mrb[2].mxu1 }
 0x22c   :  { %601 = vst [vmem:[#allocation12] sm:$0xff] %v363_v57  ;;  %v367_v61 = vpop.f32.mrb[3].mxu1 }
 0x22d   :  { %v370_v62 = vmul.f32 0.5, %v365_v59  ;;  %602 = vst [vmem:[#allocation12 + $0x8] sm:$0xff] %v365_v59 }
 0x22f   :  { %v371_v63 = vmul.f32 1.442695, %v370_v62 }
 0x231   :  { %826 = vpow2.f32 %v371_v63 }
 0x23b   :  { %v827_v2 = vpop.eup %826 }
 0x23c   :  { %v373_v3 = vmul.f32 %v827_v2, %v369_v1 }
 0x23e   :  { %v374_v4 = vadd.f32 %v373_v3, %v363_v57 }
 0x240   :  { %v375_v5 = vpack.c.bf16 %v374_v4, %v374_v4 }
 0x242   :  { %741 = vmatmul.mubr.bf16.vlgmr.msra.gmra.mrb[4].mxu0 %v375_v5 }
 0x315   :  { %v481_v9 = vpop.f32.mrb[4].mxu0 }
 0x316   :  { %v482_v10 = vadd.f32 %v659_v8, %v481_v9  ;;  %v742_v11 = vpop.f32.mrb[5].mxu0 }
 0x317   :  { %v484_v12 = vpop.f32.mrb[6].mxu0 }
 0x318   :  { %v487_v13 = vmax.f32 %v482_v10, 0.0  ;;  %v743_v14 = vpop.f32.mrb[7].mxu0 }
 0x31a   :  { %v488_v15 = vpack.c.bf16 %v487_v13, %v487_v13 }
 0x31c   :  { %761 = vmatmul.mubr.bf16.vlgmr.msra.gmra.mrb[4].mxu1 %v488_v15 }
 0x31d   :  { %949 = shalt.err (!%p946_p2)
}
 0x31e   :  { %s950_s15 = scalar_lea.hbm %s1215_s11, 256 }
 0x31f   :  { %p951_p3 = scmp.ne.s32.totalorder %s1215_s11, %s950_s15  ;;  %p954_p4 = scmp.lt.u32.totalorder %s950_s15, %s1215_s11 }
 0x321   :  { %p956_p5 = pnand %p954_p4, %p951_p3 }
 0x323   :  { %959 = shalt.err (!%p956_p5)
}
 0x324   :  { %622 = dma.vmem_to_hbm [thread:$0]  %s620_s25, 256, %s1215_s11, [#allocation13]   ;;  %v668_v0 = vld [vmem:[%s1213_s9] ss:$0 sm:$0xff] }
 0x325   :  { %s1005_s19 = smov [#allocation11]  }
 0x326   :  { %s609_s21 = sshll.u32 %s1005_s19, 4  ;;  %s610_s21 = int_to_ptr.vmem [resolvable:$true] %s609_s21 }
 0x327   :  { %s960_s22 = scalar_lea.vmem %s610_s21, 128  ;;  %p965_p7 = scmp.lt.s32.totalorder %s610_s21, %s610_s21 }
 0x328   :  { %p961_p6 = scmp.ne.s32.totalorder %s610_s21, %s960_s22  ;;  %p966_p8 = scmp.lt.s32.totalorder %s960_s22, %s960_s22 }
 0x32a   :  { %p967_p9 = por %p966_p8, %p965_p7 }
 0x32c   :  { %p968_p10 = pnand %p967_p9, %p961_p6 }
 0x3ef   :  { %v594_v16 = vpop.f32.mrb[4].mxu1 }
 0x3f0   :  { %v595_v17 = vadd.f32 %v668_v0, %v594_v16  ;;  %v762_v18 = vpop.f32.mrb[5].mxu1 }
 0x3f1   :  { %v597_v19 = vpop.f32.mrb[6].mxu1 }
 0x3f2   :  { %600 = vst [vmem:[#allocation11] sm:$0xff] %v595_v17  ;;  %v763_v20 = vpop.f32.mrb[7].mxu1 }
 0x3f3   :  { %971 = shalt.err (!%p968_p10)
}
 0x3f4   :  { %s972_s9 = scalar_lea.hbm %s1214_s10, 128 }
 0x3f5   :  { %p973_p11 = scmp.ne.s32.totalorder %s1214_s10, %s972_s9  ;;  %p976_p12 = scmp.lt.u32.totalorder %s972_s9, %s1214_s10 }
 0x3f7   :  { %p978_p13 = pnand %p976_p12, %p973_p11 }
 0x3f9   :  { %981 = shalt.err (!%p978_p13)
}
 0x3fa   :  { %612 = dma.vmem_to_hbm [thread:$0]  %s610_s21, 128, %s1214_s10, [#allocation4]  }
 0x3fb   :  { %988 = dma.done.wait [#allocation4], 128  }
 0x3fc   :  { %989 = vsyncadd [#allocation4], 4294967168 }
 0x3fd   :  { %990 = dma.done.wait [#allocation13], 256  }
 0x3fe   :  { %991 = vsyncadd [#allocation13], 4294967040 }
 0x3ff   :  { %629 = vsyncpa [#allocation3], 1 }
 0x400   :  { %630 = vsyncpa [#allocation6], 1 }
 0x401   :  { %631 = vsyncpa [#allocation9], 1 }
 0x402   :  { %632 = vsyncpa [#allocation4], 1 }
 0x403   :  { %633 = vsyncpa [#allocation13], 1 }

</bundles_post_ra>
